<compile_context>
chip_gen: v6e
topology: v6e:2x2x1
jax: 0.10.0
libtpu: 0.0.40
codegen_flags: <defaults>
</compile_context>

<pallas_src>
import functools

import jax
import jax.numpy as jnp
from jax import lax
from jax.experimental import pallas as pl
from jax.experimental.pallas import tpu as pltpu


def _gather_block_kernel(idx_ref, table_ref, out_ref, *, rows_per_block):
    # idx_ref:   (n_rows_padded,) int32 in SMEM (scalar prefetch)
    # table_ref: (V, D) whole embedding table, resident in VMEM (constant index_map)
    # out_ref:   (rows_per_block, D) output block for this grid step
    base = pl.program_id(0) * rows_per_block

    def body(r, carry):
        src = idx_ref[base + r]
        out_ref[pl.ds(r, 1), :] = table_ref[pl.ds(src, 1), :]
        return carry

    lax.fori_loop(0, rows_per_block, body, 0)


def _round_up(x, m):
    return ((x + m - 1) // m) * m


def prompt_embedding_forward(indices, embedding_weight, *, max_rows_per_block=512):
    """Pallas equivalent of PromptEmbedding.forward (embedding lookup).

    indices:          (B, T) integer array
    embedding_weight: (V, D) float array   (V = total_virtual_tokens, D = token_dim)
    returns:          (B, T, D) array, same dtype as embedding_weight
    """
    B, T = indices.shape
    V, D = embedding_weight.shape
    n_rows = B * T

    # Clamp to valid rows: the in-kernel dynamic row read has no bounds check.
    # TODO(synk): PyTorch nn.Embedding raises on out-of-range indices; here they are clamped.
    flat_idx = jnp.clip(indices.reshape(n_rows).astype(jnp.int32), 0, V - 1)

    # Rows per grid step: sublane-dense (multiple of 8), capped so the
    # double-buffered (R, D) output block stays well within the default scoped
    # VMEM limit on every generation (v7x: 64 MiB physical / 32 MiB default).
    vmem_out_budget = 16 * 1024 * 1024  # bytes for the 2x double-buffered out block
    bytes_per_row = D * jnp.dtype(embedding_weight.dtype).itemsize
    r_cap = max(8, (vmem_out_budget // (2 * bytes_per_row)) // 8 * 8)
    R = min(max_rows_per_block, r_cap, _round_up(n_rows, 8))
    R = max(8, (R // 8) * 8)

    n_rows_padded = _round_up(n_rows, R)
    if n_rows_padded > n_rows:
        flat_idx = jnp.pad(flat_idx, (0, n_rows_padded - n_rows))  # pad with row 0

    grid = (n_rows_padded // R,)

    grid_spec = pltpu.PrefetchScalarGridSpec(
        num_scalar_prefetch=1,
        grid=grid,
        in_specs=[
            # Whole table as a single block with a constant index -> loaded into
            # VMEM once and held across all grid steps.
            pl.BlockSpec((V, D), lambda i, idx_ref: (0, 0)),
        ],
        out_specs=pl.BlockSpec((R, D), lambda i, idx_ref: (i, 0)),
    )

    out2d = pl.pallas_call(
        functools.partial(_gather_block_kernel, rows_per_block=R),
        out_shape=jax.ShapeDtypeStruct((n_rows_padded, D), embedding_weight.dtype),
        grid_spec=grid_spec,
        compiler_params=pltpu.CompilerParams(
            dimension_semantics=("parallel",),
        ),
    )(flat_idx, embedding_weight)

    # Drop padded rows and reshape in the wrapper (kept out of the kernel).
    return out2d[:n_rows].reshape(B, T, D)


if __name__ == "__main__":
    # Small config consistent with PromptTuningConfig:
    #   num_virtual_tokens=8, num_transformer_submodules=1 -> total_virtual_tokens=8
    #   token_dim=128 (lane-dense minor dim), batch=2
    num_virtual_tokens = 8
    num_transformer_submodules = 1
    total_virtual_tokens = num_virtual_tokens * num_transformer_submodules
    token_dim = 128
    batch = 2

    key = jax.random.PRNGKey(0)
    k_w, k_idx = jax.random.split(key)

    # Deterministic parameter init (RANDOM init path: nn.Embedding default ~ N(0, 1)).
    # TODO(synk): TEXT init path (tokenizer + base-model word embeddings) is a
    # checkpoint/tokenizer load, not kernel compute; weights are synthesized here.
    embedding_weight = jax.random.normal(
        k_w, (total_virtual_tokens, token_dim), dtype=jnp.float32
    )

    # Typical PEFT usage is indices = arange(total_virtual_tokens) broadcast over
    # batch; random valid indices are used here for generality.
    indices = jax.random.randint(
        k_idx, (batch, total_virtual_tokens), 0, total_virtual_tokens, dtype=jnp.int32
    )

    out = prompt_embedding_forward(indices, embedding_weight)
    out = jax.block_until_ready(out)

    # Reference check (plain JAX gather). Pure row copy -> bit-exact.
    ref = jnp.take(embedding_weight, indices, axis=0)
    assert out.shape == (batch, total_virtual_tokens, token_dim)
    assert out.dtype == jnp.float32
    assert jnp.array_equal(out, ref), "mismatch vs reference gather"

    # Exercise the multi-block path (several grid steps) at small shape by
    # forcing a small block size; also covers n_rows not divisible by R.
    out_mb = prompt_embedding_forward(indices, embedding_weight, max_rows_per_block=8)
    out_mb = jax.block_until_ready(out_mb)
    assert jnp.array_equal(out_mb, ref), "mismatch vs reference gather (multi-block)"

    print("KERNEL_OK")
</pallas_src>

<mosaic_0001>
module attributes {stable_mosaic.version = 11 : i64} {
  func.func @_gather_block_kernel(%arg0: i32, %arg1: memref<16xi32, #tpu.memory_space<smem>>, %arg2: memref<8x128xf32, #tpu.memory_space<vmem>>, %arg3: memref<16x128xf32, #tpu.memory_space<vmem>>) attributes {dimension_semantics = [#tpu.dimension_semantics<parallel>], iteration_bounds = array<i64: 1>, scalar_prefetch = 1 : i64, scratch_operands = 0 : i64, tpu.core_type = #tpu.core_type<tc>, window_params = [{pipeline_mode = #tpu.pipeline_mode<synchronous>, transform_indices = @transform_0, window_bounds = array<i64: 8, 128>}, {transform_indices = @transform_1, window_bounds = array<i64: 16, 128>}]} {
    %c16_i32 = arith.constant 16 : i32
    %0 = arith.muli %arg0, %c16_i32 : i32
    %c0_i32 = arith.constant 0 : i32
    %c16_i32_0 = arith.constant 16 : i32
    %1 = arith.addi %c0_i32, %c16_i32_0 : i32
    %c1_i32 = arith.constant 1 : i32
    scf.for %arg4 = %c0_i32 to %1 step %c1_i32  : i32 {
      %2 = arith.addi %0, %arg4 : i32
      %3 = arith.index_cast %2 : i32 to index
      %4 = memref.load %arg1[%3] : memref<16xi32, #tpu.memory_space<smem>>
      %5 = arith.index_cast %4 : i32 to index
      %c0 = arith.constant 0 : index
      %6 = vector.load %arg2[%5, %c0] : memref<8x128xf32, #tpu.memory_space<vmem>>, vector<1x128xf32>
      %7 = arith.index_cast %arg4 : i32 to index
      %c0_2 = arith.constant 0 : index
      %8 = vector.load %arg3[%7, %c0_2] : memref<16x128xf32, #tpu.memory_space<vmem>>, vector<1x128xf32>
      tpu.vector_store %arg3[%7, %c0_2], %6 {strides = array<i32>} : memref<16x128xf32, #tpu.memory_space<vmem>>, vector<1x128xf32>,
    }
    %c16_i32_1 = arith.constant 16 : i32
    return
  }
  func.func @transform_0(%arg0: i32, %arg1: memref<16xi32, #tpu.memory_space<smem>>) -> (i32, i32) {
    %c0_i32 = arith.constant 0 : i32
    %c0_i32_0 = arith.constant 0 : i32
    %c0_i32_1 = arith.constant 0 : i32
    return %c0_i32, %c0_i32_0 : i32, i32
  }
  func.func @transform_1(%arg0: i32, %arg1: memref<16xi32, #tpu.memory_space<smem>>) -> (i32, i32) {
    %c0_i32 = arith.constant 0 : i32
    %c0_i32_0 = arith.constant 0 : i32
    return %arg0, %c0_i32 : i32, i32
  }
}

</mosaic_0001>

<bundles_post_ra>
// kernel: tpu_custom_call.1
= control target key start
LH: loop header
LB: loop body
LE: loop exit
PB: predicated region body
PF: predicated region fallthrough
CT: control target
= control target key end

     0   :  { %s138_s9 = smov [#allocation3]   ;;  %s167_s0 = inlined_call_operand.hbm [shape: s32[16], index: 0, kind: input, shape index: {}]   ;;  %s168_s1 = inlined_call_operand.hbm [shape: f32[8,128], index: 1, kind: input, shape index: {}]   ;;  %s169_s2 = inlined_call_operand.hbm [shape: f32[16,128], index: 2, kind: output, shape index: {}]  }
   0x1   :  { %8 = dma.hbm_to_smem %s167_s0, 16, %s138_s9, [#allocation2] }
   0x2   :  { %128 = dma.done.wait [#allocation2], 16 }
   0x3   :  { %129 = vsyncadd [#allocation2], 4294967280 }
   0x4   :  { %10 = sfence }
   0x5   :  { %11 = vsyncpa [#allocation5], 0 }
   0x6   :  { %12 = vsyncpa [#allocation6], 0  ;;  %s139_s12 = smov [#allocation4]  }
   0x7   :  { %s19_s13 = sshll.u32 %s139_s12, 4  ;;  %s20_s13 = int_to_ptr.vmem [resolvable:$true] %s19_s13 }
   0x8   :  { %s92_s14 = scalar_lea.vmem %s20_s13, 128  ;;  %p97_p1 = scmp.lt.s32.totalorder %s20_s13, %s20_s13 }
   0x9   :  { %p93_p0 = scmp.ne.s32.totalorder %s20_s13, %s92_s14  ;;  %p98_p2 = scmp.lt.s32.totalorder %s92_s14, %s92_s14 }
   0xb   :  { %p99_p3 = por %p98_p2, %p97_p1 }
   0xd   :  { %p100_p4 = pnand %p99_p3, %p93_p0 }
   0xf   :  { %103 = shalt.err (!%p100_p4)
}
  0x10   :  { %22 = dma.hbm_to_vmem [thread:$0]  %s168_s1, 128, %s20_s13, [#allocation5]  }
  0x11   :  { %130 = dma.done.wait [#allocation5], 128  }
  0x12   :  { %131 = vsyncadd [#allocation5], 4294967168  ;;  %s134_s0 = smov 0  }
  0x13 LB: > { %s34_s17 = sld [smem:[#allocation3 + %s136_s0]]  ;;  %s37_s19 = scalar_lea.vmem [#allocation7], %s136_s0  ;;  %s136_s0 = sphi %s134_s0, %s32_s0  }
  0x14   : > { %s32_s0 = sadd.s32 1, %s136_s0  }
  0x15   : > { %p29_p5 = scmp.ge.s32.totalorder %s32_s0, 16  }
  0x16   :  { %s140_s20 = smov (%p29_p5), [#allocation7]  }
  0x17   :  { %31 = sbr.rel (!%p29_p5) target bundleno = 19 (0x13), region = 37  ;;  %s44_s21 = sshll.u32 (%p29_p5), %s140_s20, 4  ;;  %s45_s21 = int_to_ptr.vmem [resolvable:$true] %s44_s21 }
  0x18   :  { %s104_s22 = scalar_lea.vmem (%p29_p5), %s45_s21, 256  ;;  %p109_p7 = scmp.lt.s32.totalorder (%p29_p5), %s45_s21, %s45_s21 }
  0x19   : > { %s35_s18 = scalar_lea.vmem [#allocation4], %s34_s17  ;;  %p105_p6 = scmp.ne.s32.totalorder (%p29_p5), %s45_s21, %s104_s22 }
  0x1a   : > { %v36_v0 = vld [vmem:[%s35_s18] sm:$0x1]  ;;  %p110_p8 = scmp.lt.s32.totalorder (%p29_p5), %s104_s22, %s104_s22 }
  0x1b   : > { %38 = vst [vmem:[%s37_s19] sm:$0x1] %v36_v0 }
  0x1c   :  { %p111_p9 = por %p110_p8, %p109_p7 }
  0x1e   :  { %p112_p10 = pnand %p111_p9, %p105_p6 }
  0x20   :  { %115 = shalt.err (!%p112_p10)
}
  0x21   :  { %s141_s1 = smov 128   ;;  %s142_s23 = smov 8  }
  0x22   :  { %50 = dma.vmem_to_hbm [thread:$0]  %s45_s21, 256, %s169_s2, [#allocation6], %s141_s1, %s141_s1, %s142_s23  }
  0x23   :  { %132 = dma.done.wait [#allocation6], 256  }
  0x24   :  { %133 = vsyncadd [#allocation6], 4294967040 }
  0x25   :  { %54 = vsyncpa [#allocation5], 1 }
  0x26   :  { %55 = vsyncpa [#allocation6], 1 }

</bundles_post_ra>
